<compile_context>
chip_gen: v5e
topology: v5e:2x2
jax: 0.10.0
libtpu: 0.0.40
codegen_flags: <defaults>
</compile_context>

<pallas_src>
import functools

import jax
import jax.numpy as jnp
from jax.experimental import pallas as pl
from jax.experimental.pallas import tpu as pltpu


def _row_align(dtype):
    # Sublane alignment: 8 rows for 4-byte dtypes, 16 for 2-byte (bf16 packing),
    # so dynamic row slices of the resident block stay tile-aligned.
    return max(8, 32 // jnp.dtype(dtype).itemsize)


def _pick_tile_rows(n_rows, requested, align):
    """Largest tile <= requested that divides n_rows and respects sublane alignment;
    falls back to a single full-size tile (always legal: block == full dim)."""
    if requested is None:
        # Fill the 256-row MXU (v6e/v7x) when the batch is big enough; otherwise a
        # single grid step (avoids ~0.35us/step overhead at tiny shapes).
        requested = n_rows if n_rows <= 256 else 256
    requested = max(1, min(int(requested), n_rows))
    if requested >= n_rows:
        return n_rows
    t = (requested // align) * align
    while t >= align:
        if n_rows % t == 0:
            return t
        t -= align
    return n_rows


# ---------------------------------------------------------------------------
# Prepass: (optional) L2-normalize + cast to the MXU dtype -- done ONCE.
# ---------------------------------------------------------------------------
def _prep_kernel(x_ref, out_ref, *, hidden_norm):
    x = x_ref[...].astype(jnp.float32)
    if hidden_norm:
        # F.normalize(x, 2, -1): x / max(||x||, 1e-12) == x * rsqrt(max(||x||^2, 1e-24))
        x = x * jax.lax.rsqrt(
            jnp.maximum(jnp.sum(x * x, axis=-1, keepdims=True), jnp.float32(1e-24)))
    out_ref[...] = x.astype(out_ref.dtype)


def _preprocess(hidden, *, hidden_norm, out_dtype):
    n_rows, d = hidden.shape
    if not hidden_norm and hidden.dtype == out_dtype:
        return hidden  # nothing to do
    tile = _pick_tile_rows(n_rows, 512, _row_align(out_dtype))
    grid = n_rows // tile
    return pl.pallas_call(
        functools.partial(_prep_kernel, hidden_norm=bool(hidden_norm)),
        out_shape=jax.ShapeDtypeStruct((n_rows, d), out_dtype),
        grid=(grid,),
        in_specs=[pl.BlockSpec((tile, d), lambda i: (i, 0))],
        out_specs=pl.BlockSpec((tile, d), lambda i: (i, 0)),
        compiler_params=pltpu.CompilerParams(dimension_semantics=("parallel",)),
    )(hidden)


# ---------------------------------------------------------------------------
# Main kernel: one row tile of the fused NT-Xent loss.
# ---------------------------------------------------------------------------
def _nt_xent_kernel(hn_ref, out_ref, *, batch_size, n_rows, tile_rows,
                    inv_temperature, large_num, narrow_pos, high_precision):
    """hn_ref : [N, D] prepped (normalized, MXU-dtype) hidden, resident in VMEM.
       out_ref: [1, 1] per-tile partial sum of (lse - positive)."""
    row0 = pl.multiple_of(pl.program_id(0) * tile_rows, tile_rows)

    rows = hn_ref[pl.ds(row0, tile_rows), :]      # [TR, D] queries (slice of resident keys)
    keys = hn_ref[...]                            # [N,  D] resident keys

    # Similarity tile on the MXU: contract the feature dim of both operands
    # (rows @ keys.T, NT form -- same pattern as flash-attention q.k^T), f32 accumulation.
    precision = jax.lax.Precision.HIGHEST if high_precision else None
    gram = jax.lax.dot_general(
        rows, keys, dimension_numbers=(((1,), (1,)), ((), ())),
        preferred_element_type=jnp.float32, precision=precision)        # [TR, N]
    logits = gram * jnp.float32(inv_temperature)

    col = jax.lax.broadcasted_iota(jnp.int32, (tile_rows, n_rows), 1)
    row = jax.lax.broadcasted_iota(jnp.int32, (tile_rows, n_rows), 0) + row0

    # Self-similarity mask (diag of G == diagonals of the aa/bb blocks).
    logits = logits - jnp.where(col == row, jnp.float32(large_num), jnp.float32(0.0))

    if narrow_pos:
        # Tile lies entirely inside one half -> partner rows are a contiguous slice of
        # the resident keys: rowwise dot over D instead of a masked TR x N reduction.
        partner0 = jnp.where(row0 < batch_size, row0 + batch_size, row0 - batch_size)
        partner0 = pl.multiple_of(partner0, tile_rows)
        partner = hn_ref[pl.ds(partner0, tile_rows), :]                 # [TR, D]
        pos = jnp.sum(rows.astype(jnp.float32) * partner.astype(jnp.float32),
                      axis=-1, keepdims=True) * jnp.float32(inv_temperature)
    else:
        # General fallback (tile straddles the half boundary): positive of row r is at
        # column (r + B) mod 2B.
        pos_col = jnp.where(row < batch_size, row + batch_size, row - batch_size)
        pos = jnp.sum(jnp.where(col == pos_col, logits, jnp.float32(0.0)),
                      axis=1, keepdims=True)                            # [TR, 1]

    # Row-wise logsumexp (cross-entropy denominator), numerically stable, f32.
    m = jnp.max(logits, axis=1, keepdims=True)
    lse = m + jnp.log(jnp.sum(jnp.exp(logits - m), axis=1, keepdims=True))

    # Per-tile scalar partial sum (scalarized / lane-friendly output).
    out_ref[...] = jnp.sum(lse - pos, keepdims=True)                    # (1, 1)


def contrastive_loss(hidden, *, hidden_norm=True, temperature=1.0, weights=1.0,
                     large_num=1e9, tile_rows=None, matmul_dtype=None):
    """Fused SimCLR NT-Xent loss. hidden: [2B, D] (two stacked views) -> scalar."""
    n_rows, d = hidden.shape
    if n_rows % 2 != 0:
        raise ValueError("hidden must stack two views: leading dim must be even")
    batch_size = n_rows // 2

    if matmul_dtype is None:
        # bf16 MXU inputs are safe after L2-normalization (values in [-1,1]); keep f32
        # for the un-normalized path where magnitudes can be large.
        matmul_dtype = jnp.bfloat16 if hidden_norm else jnp.float32
    matmul_dtype = jnp.dtype(matmul_dtype)

    # One-time normalize + cast (prepass kernel); keys then stay in MXU dtype.
    hn = _preprocess(hidden, hidden_norm=hidden_norm, out_dtype=matmul_dtype)

    align = _row_align(matmul_dtype)
    tile_rows = _pick_tile_rows(n_rows, tile_rows, align)
    grid = n_rows // tile_rows
    narrow_pos = (tile_rows <= batch_size) and (batch_size % tile_rows == 0)

    kernel = functools.partial(
        _nt_xent_kernel,
        batch_size=batch_size, n_rows=n_rows, tile_rows=tile_rows,
        inv_temperature=1.0 / float(temperature), large_num=float(large_num),
        narrow_pos=narrow_pos,
        high_precision=(matmul_dtype == jnp.dtype(jnp.float32)))

    item = matmul_dtype.itemsize
    # Resident keys (pipeline-double-buffered) + f32 logits/exp temporaries + slices.
    vmem_need = (2 * n_rows * d * item
                 + 4 * tile_rows * n_rows * 4
                 + 4 * tile_rows * d * 4
                 + (1 << 21))
    vmem_limit = int(min(100 * (1 << 20), max(2 * vmem_need, 32 * (1 << 20))))

    cost = pl.CostEstimate(
        flops=2 * n_rows * n_rows * d,
        transcendentals=n_rows * (n_rows + 1),
        bytes_accessed=n_rows * d * item + grid * 4)

    partial_sums = pl.pallas_call(
        kernel,
        out_shape=jax.ShapeDtypeStruct((grid, 1), jnp.float32),
        grid=(grid,),
        in_specs=[
            # Full prepped hidden, resident across the whole grid (constant index_map
            # -> no per-step re-DMA; the query tile is sliced from it in-kernel).
            pl.BlockSpec((n_rows, d), lambda i: (0, 0)),
        ],
        out_specs=pl.BlockSpec((1, 1), lambda i: (i, 0)),
        compiler_params=pltpu.CompilerParams(
            dimension_semantics=("parallel",),
            vmem_limit_bytes=vmem_limit),
        cost_estimate=cost,
    )(hn)

    # loss_a + loss_b: each a mean over B rows, each scaled by `weights`.
    return (jnp.float32(weights) / jnp.float32(batch_size)) * jnp.sum(partial_sums)


def reference(hidden, hidden_norm=True, temperature=1.0, weights=1.0, large_num=1e9):
    """Pure-JAX f32 mirror of the PyTorch module."""
    hidden = hidden.astype(jnp.float32)
    if hidden_norm:
        norm = jnp.sqrt(jnp.sum(hidden * hidden, axis=-1, keepdims=True))
        hidden = hidden / jnp.maximum(norm, 1e-12)
    b = hidden.shape[0] // 2
    h1, h2 = hidden[:b], hidden[b:]
    masks = jnp.eye(b, dtype=jnp.float32)
    logits_aa = h1 @ h1.T / temperature - masks * large_num
    logits_bb = h2 @ h2.T / temperature - masks * large_num
    logits_ab = h1 @ h2.T / temperature
    logits_ba = h2 @ h1.T / temperature
    logits_a = jnp.concatenate([logits_ab, logits_aa], axis=1)
    logits_b = jnp.concatenate([logits_ba, logits_bb], axis=1)
    labels = jnp.arange(b)

    def ce(logits):
        lse = jax.scipy.special.logsumexp(logits, axis=1)
        return jnp.mean(lse - logits[jnp.arange(b), labels])

    return weights * ce(logits_a) + weights * ce(logits_b)


if __name__ == "__main__":
    key = jax.random.PRNGKey(0)
    k1, k2, k3 = jax.random.split(key, 3)

    # hidden = [2 * batch, features]: two stacked augmented views (batch=8, feat=32).
    hidden = jax.random.normal(k1, (16, 32), dtype=jnp.float32)

    # Case 1: module defaults (hidden_norm=True, temperature=1.0, weights=1.0).
    out = jax.block_until_ready(contrastive_loss(hidden))
    ref = reference(hidden)
    assert out.shape == (), out.shape
    assert jnp.allclose(out, ref, atol=5e-2, rtol=5e-2), (float(out), float(ref))

    # Case 2: non-default hyper-parameters, un-normalized path (f32 matmul option).
    out2 = jax.block_until_ready(
        contrastive_loss(hidden, hidden_norm=False, temperature=2.0, weights=0.5))
    ref2 = reference(hidden, hidden_norm=False, temperature=2.0, weights=0.5)
    assert jnp.allclose(out2, ref2, atol=5e-2, rtol=5e-2), (float(out2), float(ref2))

    # Case 3: multi-tile grid (grid=3); B=24 not a multiple of 16 -> general
    # (full-width) positive-extraction fallback path.
    hidden3 = jax.random.normal(k2, (48, 32), dtype=jnp.float32)
    out3 = jax.block_until_ready(contrastive_loss(hidden3, tile_rows=16))
    ref3 = reference(hidden3)
    assert jnp.allclose(out3, ref3, atol=5e-2, rtol=5e-2), (float(out3), float(ref3))

    # Case 4: multi-tile grid (grid=4); tile_rows divides B=32 -> narrow
    # (contiguous-partner) positive extraction path.
    hidden4 = jax.random.normal(k3, (64, 32), dtype=jnp.float32)
    out4 = jax.block_until_ready(contrastive_loss(hidden4, tile_rows=16))
    ref4 = reference(hidden4)
    assert jnp.allclose(out4, ref4, atol=5e-2, rtol=5e-2), (float(out4), float(ref4))

    print("KERNEL_OK")
</pallas_src>

<mosaic_0001>
module attributes {stable_mosaic.version = 11 : i64} {
  func.func @_prep_kernel(%arg0: i32, %arg1: memref<16x32xf32, #tpu.memory_space<vmem>>, %arg2: memref<16x32xbf16, #tpu.memory_space<vmem>>) attributes {dimension_semantics = [#tpu.dimension_semantics<parallel>], iteration_bounds = array<i64: 1>, scalar_prefetch = 0 : i64, scratch_operands = 0 : i64, tpu.core_type = #tpu.core_type<tc>, window_params = [{transform_indices = @transform_0, window_bounds = array<i64: 16, 32>}, {transform_indices = @transform_1, window_bounds = array<i64: 16, 32>}]} {
    %c0 = arith.constant 0 : index
    %c0_0 = arith.constant 0 : index
    %0 = vector.load %arg1[%c0, %c0_0] : memref<16x32xf32, #tpu.memory_space<vmem>>, vector<16x32xf32>
    %1 = arith.mulf %0, %0 : vector<16x32xf32>
    %cst = arith.constant dense<0.000000e+00> : vector<16xf32>
    %2 = vector.multi_reduction <add>, %1, %cst [1] : vector<16x32xf32> to vector<16xf32>
    %3 = vector.shape_cast %2 : vector<16xf32> to vector<16x1xf32>
    %cst_1 = arith.constant 1.000000e-24 : f32
    %4 = vector.broadcast %cst_1 : f32 to vector<16x1xf32>
    %5 = arith.maximumf %3, %4 : vector<16x1xf32>
    %6 = math.rsqrt %5 : vector<16x1xf32>
    %7 = vector.broadcast %6 : vector<16x1xf32> to vector<16x32xf32>
    %8 = arith.mulf %0, %7 : vector<16x32xf32>
    %9 = arith.truncf %8 : vector<16x32xf32> to vector<16x32xbf16>
    %c0_2 = arith.constant 0 : index
    %c0_3 = arith.constant 0 : index
    %10 = vector.load %arg2[%c0_2, %c0_3] : memref<16x32xbf16, #tpu.memory_space<vmem>>, vector<16x32xbf16>
    tpu.vector_store %arg2[%c0_2, %c0_3], %9 {strides = array<i32>} : memref<16x32xbf16, #tpu.memory_space<vmem>>, vector<16x32xbf16>,
    return
  }
  func.func @transform_0(%arg0: i32) -> (i32, i32) {
    %c0_i32 = arith.constant 0 : i32
    %c0_i32_0 = arith.constant 0 : i32
    return %arg0, %c0_i32 : i32, i32
  }
  func.func @transform_1(%arg0: i32) -> (i32, i32) {
    %c0_i32 = arith.constant 0 : i32
    %c0_i32_0 = arith.constant 0 : i32
    return %arg0, %c0_i32 : i32, i32
  }
}

</mosaic_0001>

<bundles_post_ra>
// kernel: tpu_custom_call.1
= control target key start
LH: loop header
LB: loop body
LE: loop exit
PB: predicated region body
PF: predicated region fallthrough
CT: control target
= control target key end

     0   :  { %6 = vsyncpa [#allocation3], 0  ;;  %s170_s0 = inlined_call_operand.hbm [shape: f32[16,32], index: 0, kind: input, shape index: {}]   ;;  %s171_s1 = inlined_call_operand.hbm [shape: bf16[16,32], index: 1, kind: output, shape index: {}]  }
   0x1   :  { %7 = vsyncpa [#allocation4], 0  ;;  %s12_s8 = sshll.u32 %s170_s0, 4  ;;  %s146_s9 = smov [#allocation2]   ;;  %s13_s8 = int_to_ptr.hbm [resolvable:$true] %s12_s8 }
   0x2   :  { %s14_s10 = sshll.u32 %s146_s9, 4  ;;  %s147_s11 = smov 128   ;;  %s15_s10 = int_to_ptr.vmem [resolvable:$true] %s14_s10 }
   0x3   :  { %s148_s12 = smov 8  }
   0x4   :  { %20 = dma.hbm_to_vmem [thread:$0]  %s13_s8, 256, %s15_s10, [#allocation3], %s147_s11, %s147_s11, %s148_s12  }
   0x5   :  { %142 = dma.done.wait [#allocation3], 256  }
   0x6   :  { %143 = vsyncadd [#allocation3], 4294967040  ;;  %v25_v0 = vld [vmem:[#allocation2] sm:$0xff]  ;;  %vm29_vm0 = vcmask 261120   ;;  %v26_v2 = vld [vmem:[#allocation2 + $0x8] sm:$0xff]  ;;  %vm62_vm4 = vcmask 257024  }
   0x7   :  { %v27_v1 = vmul.f32 %v25_v0, %v25_v0  ;;  %v28_v4 = vmul.f32 %v26_v2, %v26_v2  ;;  %s149_s0 = smov [#allocation5]   ;;  %s71_s16 = sshll.u32 %s171_s1, 4  ;;  %s72_s16 = int_to_ptr.hbm [resolvable:$true] %s71_s16 }
   0x8   :  { %s69_s13 = sshll.u32 %s149_s0, 4  ;;  %s150_s17 = smov 64   ;;  %s70_s13 = int_to_ptr.vmem [resolvable:$true] %s69_s13 }
   0x9   :  { %v30_v3 = vsel %vm29_vm0, %v27_v1, 0.0  ;;  %v33_v5 = vsel %vm29_vm0, %v28_v4, 0.0  ;;  %s151_s18 = smov 4  }
   0xa   :  { %31 = vadd.xlane.f32.xlu0 %v30_v3 }
  0x12   :  { %34 = vadd.xlane.f32.xlu0 %v33_v5 }
  0x7d   :  { %v32_v6 = vpop.xlane.xlu0 %31 }
  0x7e   :  { %v36_v7 = vmax.f32 %v32_v6, 1e-24 }
  0x80   :  { %90 = vrsqrt.f32 %v36_v7  ;;  %vm44_vm2 = vweird.f32 %v36_v7 }
  0x85   :  { %v35_v8 = vpop.xlane.xlu0 %34 }
  0x86   :  { %v91_v9 = vpop.eup %90  ;;  %v37_v10 = vmax.f32 %v35_v8, 1e-24 }
  0x87   :  { %v39_v11 = vmul.f32 %v91_v9, %v36_v7  ;;  %vm45_vm1 = vweird.f32 %v91_v9 }
  0x88   :  { %92 = vrsqrt.f32 %v37_v10  ;;  %vm46_vm3 = vmor %vm44_vm2, %vm45_vm1  ;;  %vm54_vm6 = vweird.f32 %v37_v10 }
  0x89   :  { %v40_v12 = vmul.f32 %v91_v9, %v39_v11 }
  0x8b   :  { %v41_v13 = vmul.f32 0.5, %v40_v12 }
  0x8d   :  { %v42_v14 = vsub.f32 1.5, %v41_v13 }
  0x8e   :  { %v93_v15 = vpop.eup %92 }
  0x8f   :  { %v43_v16 = vmul.f32 %v91_v9, %v42_v14  ;;  %v49_v17 = vmul.f32 %v93_v15, %v37_v10  ;;  %vm55_vm5 = vweird.f32 %v93_v15 }
  0x90   :  { %vm56_vm7 = vmor %vm54_vm6, %vm55_vm5 }
  0x91   :  { %v47_v18 = vsel %vm46_vm3, %v91_v9, %v43_v16  ;;  %v50_v19 = vmul.f32 %v93_v15, %v49_v17 }
  0x92   :  { %v58_v20 = vmul.f32 %v47_v18, %v25_v0 }
  0x93   :  { %v51_v21 = vmul.f32 0.5, %v50_v19 }
  0x94   :  { %v60_v22 = vpack.c.bf16 %v58_v20, %v58_v20 }
  0x95   :  { %v52_v23 = vsub.f32 1.5, %v51_v21 }
  0x96   :  { %63 = vst.msk [vmem:[#allocation5] sm:$0xf] %vm62_vm4, %v60_v22 }
  0x97   :  { %v53_v24 = vmul.f32 %v93_v15, %v52_v23 }
  0x99   :  { %v57_v25 = vsel %vm56_vm7, %v93_v15, %v53_v24 }
  0x9a   :  { %v59_v26 = vmul.f32 %v57_v25, %v26_v2 }
  0x9c   :  { %v61_v27 = vpack.c.bf16 %v59_v26, %v59_v26 }
  0x9e   :  { %64 = vst.msk [vmem:[#allocation5 + $0x4] sm:$0xf] %vm62_vm4, %v61_v27 }
  0x9f   :  { %77 = dma.vmem_to_hbm [thread:$0]  %s70_s13, 128, %s72_s16, [#allocation4], %s150_s17, %s150_s17, %s151_s18  }
  0xa0   :  { %144 = dma.done.wait [#allocation4], 128  }
  0xa1   :  { %145 = vsyncadd [#allocation4], 4294967168 }
  0xa2   :  { %82 = vsyncpa [#allocation3], 1 }
  0xa3   :  { %83 = vsyncpa [#allocation4], 1 }

</bundles_post_ra>
